<compile_context>
chip_gen: v7x
topology: tpu7x:2x2x1
jax: 0.10.0
libtpu: 0.0.40
codegen_flags: <defaults>
</compile_context>

<pallas_src>
import functools
import math

import jax
import jax.numpy as jnp
from jax.experimental import pallas as pl
from jax.experimental.pallas import tpu as pltpu


def _round_up(x, m):
    return (x + m - 1) // m * m


def _activation(z, beta):
    """ReLU (beta<=0) or PyTorch nn.Softplus(beta, threshold=20), in f32."""
    if beta and beta > 0.0:
        t = beta * z
        sp = (jnp.maximum(t, 0.0) + jnp.log(1.0 + jnp.exp(-jnp.abs(t)))) / beta
        return jnp.where(t > 20.0, z, sp)
    return jnp.maximum(z, 0.0)


def _resblock_body(x_ref, w0_ref, b0_ref, w1_ref, b1_ref, o_ref, ws_ref, *, beta):
    x = x_ref[...]                                    # [tm, Kp] (MXU dtype)
    xf = x.astype(jnp.float32)
    a0 = _activation(xf, beta).astype(w0_ref.dtype)
    h = jnp.dot(a0, w0_ref[...], preferred_element_type=jnp.float32) + b0_ref[...]
    a1 = _activation(h, beta).astype(w1_ref.dtype)
    dx = jnp.dot(a1, w1_ref[...], preferred_element_type=jnp.float32) + b1_ref[...]
    if ws_ref is not None:
        xs = jnp.dot(x, ws_ref[...], preferred_element_type=jnp.float32)
    else:
        xs = xf                                       # identity residual (Kp == Np)
    o_ref[...] = (xs + dx).astype(o_ref.dtype)


def _kernel_identity(x_ref, w0_ref, b0_ref, w1_ref, b1_ref, o_ref, *, beta):
    _resblock_body(x_ref, w0_ref, b0_ref, w1_ref, b1_ref, o_ref, None, beta=beta)


def _kernel_shortcut(x_ref, w0_ref, b0_ref, w1_ref, b1_ref, ws_ref, o_ref, *, beta):
    _resblock_body(x_ref, w0_ref, b0_ref, w1_ref, b1_ref, o_ref, ws_ref, beta=beta)


def fc_resblock_forward(x, w0, b0, w1, b1, ws=None, *, beta=0.0, tm=256,
                        mxu_dtype=jnp.bfloat16):
    """FCResBlock forward.

    x : [B, size_in]
    w0: [size_h, size_in],  b0: [size_h]      (fc_0, PyTorch layout)
    w1: [size_out, size_h], b1: [size_out]    (fc_1)
    ws: [size_out, size_in] or None           (shortcut; None => identity)
    """
    B, size_in = x.shape
    size_h = w0.shape[0]
    size_out = w1.shape[0]
    if ws is None:
        assert size_in == size_out, "identity residual requires size_in == size_out"
    out_dtype = x.dtype

    # lane-dense padded sizes (multiples of 128)
    Kp = _round_up(size_in, 128)
    Hp = _round_up(size_h, 128)
    Np = _round_up(size_out, 128)

    # row tile: as big as requested (amortizes ~600-cycle/step grid overhead),
    # clamped to the (8-aligned) padded batch.
    tm = max(8, min(_round_up(tm, 8), _round_up(B, 8)))
    Bp = _round_up(B, tm)

    # zero-pad + cast operands; zero weight rows kill padded-feature contributions
    # (so softplus(0) != 0 on padded lanes cannot leak into the result).
    xp = jnp.zeros((Bp, Kp), mxu_dtype).at[:B, :size_in].set(x.astype(mxu_dtype))
    w0t = jnp.zeros((Kp, Hp), mxu_dtype).at[:size_in, :size_h].set(
        jnp.asarray(w0, mxu_dtype).T)
    b0p = jnp.zeros((1, Hp), jnp.float32).at[0, :size_h].set(
        jnp.asarray(b0, jnp.float32))
    w1t = jnp.zeros((Hp, Np), mxu_dtype).at[:size_h, :size_out].set(
        jnp.asarray(w1, mxu_dtype).T)
    b1p = jnp.zeros((1, Np), jnp.float32).at[0, :size_out].set(
        jnp.asarray(b1, jnp.float32))

    grid = (Bp // tm,)
    full = lambda i: (0, 0)
    row = lambda i: (i, 0)

    in_specs = [
        pl.BlockSpec((tm, Kp), row),      # x row tile
        pl.BlockSpec((Kp, Hp), full),     # W0^T (resident in VMEM)
        pl.BlockSpec((1, Hp), full),      # b0
        pl.BlockSpec((Hp, Np), full),     # W1^T (resident)
        pl.BlockSpec((1, Np), full),      # b1
    ]
    operands = [xp, w0t, b0p, w1t, b1p]

    if ws is not None:
        wst = jnp.zeros((Kp, Np), mxu_dtype).at[:size_in, :size_out].set(
            jnp.asarray(ws, mxu_dtype).T)
        in_specs.append(pl.BlockSpec((Kp, Np), full))   # shortcut W^T (resident)
        operands.append(wst)
        kernel = functools.partial(_kernel_shortcut, beta=float(beta))
    else:
        kernel = functools.partial(_kernel_identity, beta=float(beta))

    # TODO(synk): for very large feature dims (resident bf16 weights approaching
    # the v7x 64 MiB VMEM budget) add an N (and K) grid axis with a pl.when
    # initialized accumulator instead of keeping W^T fully resident.
    out = pl.pallas_call(
        kernel,
        out_shape=jax.ShapeDtypeStruct((Bp, Np), out_dtype),
        grid_spec=pltpu.PrefetchScalarGridSpec(
            num_scalar_prefetch=0,
            grid=grid,
            in_specs=in_specs,
            out_specs=pl.BlockSpec((tm, Np), row),
        ),
        compiler_params=pltpu.CompilerParams(
            dimension_semantics=("parallel",),
            vmem_limit_bytes=48 * 1024 * 1024,
        ),
    )(*operands)

    return out[:B, :size_out]


def _reference(x, w0, b0, w1, b1, ws, beta):
    """Pure-JAX f32 reference mirroring the PyTorch forward."""
    net = _activation(x, beta) @ w0.T + b0
    dx = _activation(net, beta) @ w1.T + b1
    xs = x if ws is None else x @ ws.T
    return xs + dx


def _check(out, ref, tag):
    err = float(jnp.max(jnp.abs(out - ref)))
    scale = float(jnp.max(jnp.abs(ref))) + 1e-6
    assert err / scale < 3e-2, f"{tag}: relative error {err / scale:.4g} too large"


if __name__ == "__main__":
    key = jax.random.PRNGKey(0)
    ks = jax.random.split(key, 8)

    B = 512

    # --- config 1: size_in == size_out (identity residual), ReLU (beta=0) ---
    size_in = size_h = size_out = 64
    x = jax.random.normal(ks[0], (B, size_in), jnp.float32)
    w0 = jax.random.normal(ks[1], (size_h, size_in), jnp.float32) * math.sqrt(2.0 / size_in)
    b0 = jax.random.normal(ks[2], (size_h,), jnp.float32) * 0.1
    w1 = jax.random.normal(ks[3], (size_out, size_h), jnp.float32) * math.sqrt(2.0 / size_h)
    b1 = jax.random.normal(ks[4], (size_out,), jnp.float32) * 0.1

    out = jax.block_until_ready(fc_resblock_forward(x, w0, b0, w1, b1, beta=0.0))
    assert out.shape == (B, size_out)
    _check(out, _reference(x, w0, b0, w1, b1, None, 0.0), "identity/relu")

    # --- config 2: size_in != size_out (linear shortcut), Softplus(beta=1) ---
    size_in2, size_h2, size_out2 = 48, 32, 96
    x2 = jax.random.normal(ks[5], (B, size_in2), jnp.float32)
    w0b = jax.random.normal(ks[6], (size_h2, size_in2), jnp.float32) * math.sqrt(2.0 / size_in2)
    b0b = jnp.zeros((size_h2,), jnp.float32)
    w1b = jax.random.normal(ks[7], (size_out2, size_h2), jnp.float32) * math.sqrt(2.0 / size_h2)
    b1b = jnp.zeros((size_out2,), jnp.float32)
    wsb = jax.random.normal(ks[0], (size_out2, size_in2), jnp.float32) * math.sqrt(2.0 / size_in2)

    out2 = jax.block_until_ready(
        fc_resblock_forward(x2, w0b, b0b, w1b, b1b, wsb, beta=1.0))
    assert out2.shape == (B, size_out2)
    _check(out2, _reference(x2, w0b, b0b, w1b, b1b, wsb, 1.0), "shortcut/softplus")

    print("KERNEL_OK")
</pallas_src>

<mosaic_0001>
module attributes {stable_mosaic.version = 11 : i64} {
  func.func @_kernel_identity(%arg0: i32, %arg1: memref<256x128xbf16, #tpu.memory_space<vmem>>, %arg2: memref<128x128xbf16, #tpu.memory_space<vmem>>, %arg3: memref<1x128xf32, #tpu.memory_space<vmem>>, %arg4: memref<128x128xbf16, #tpu.memory_space<vmem>>, %arg5: memref<1x128xf32, #tpu.memory_space<vmem>>, %arg6: memref<256x128xf32, #tpu.memory_space<vmem>>) attributes {dimension_semantics = [#tpu.dimension_semantics<parallel>], iteration_bounds = array<i64: 2>, scalar_prefetch = 0 : i64, scratch_operands = 0 : i64, tpu.core_type = #tpu.core_type<tc>, window_params = [{transform_indices = @transform_0, window_bounds = array<i64: 256, 128>}, {pipeline_mode = #tpu.pipeline_mode<synchronous>, transform_indices = @transform_1, window_bounds = array<i64: 128, 128>}, {pipeline_mode = #tpu.pipeline_mode<synchronous>, transform_indices = @transform_2, window_bounds = array<i64: 1, 128>}, {pipeline_mode = #tpu.pipeline_mode<synchronous>, transform_indices = @transform_3, window_bounds = array<i64: 128, 128>}, {pipeline_mode = #tpu.pipeline_mode<synchronous>, transform_indices = @transform_4, window_bounds = array<i64: 1, 128>}, {transform_indices = @transform_5, window_bounds = array<i64: 256, 128>}]} {
    %c0 = arith.constant 0 : index
    %c0_0 = arith.constant 0 : index
    %0 = vector.load %arg1[%c0, %c0_0] : memref<256x128xbf16, #tpu.memory_space<vmem>>, vector<256x128xbf16>
    %1 = arith.extf %0 : vector<256x128xbf16> to vector<256x128xf32>
    %cst = arith.constant 0.000000e+00 : f32
    %2 = vector.broadcast %cst : f32 to vector<256x128xf32>
    %3 = arith.maximumf %1, %2 : vector<256x128xf32>
    %4 = arith.truncf %3 : vector<256x128xf32> to vector<256x128xbf16>
    %c0_1 = arith.constant 0 : index
    %c0_2 = arith.constant 0 : index
    %5 = vector.load %arg2[%c0_1, %c0_2] : memref<128x128xbf16, #tpu.memory_space<vmem>>, vector<128x128xbf16>
    %cst_3 = arith.constant dense<0.000000e+00> : vector<256x128xf32>
    %6 = tpu.matmul %4, %5, %cst_3 {dimension_numbers = #tpu.dot_dimension_numbers<[1], [0], [0], [1], [0, 0, 1, 1], [], []>} : vector<256x128xbf16>, vector<128x128xbf16>, vector<256x128xf32> -> vector<256x128xf32>
    %c0_4 = arith.constant 0 : index
    %c0_5 = arith.constant 0 : index
    %7 = vector.load %arg3[%c0_4, %c0_5] : memref<1x128xf32, #tpu.memory_space<vmem>>, vector<1x128xf32>
    %8 = vector.broadcast %7 : vector<1x128xf32> to vector<256x128xf32>
    %9 = arith.addf %6, %8 : vector<256x128xf32>
    %cst_6 = arith.constant 0.000000e+00 : f32
    %10 = vector.broadcast %cst_6 : f32 to vector<256x128xf32>
    %11 = arith.maximumf %9, %10 : vector<256x128xf32>
    %12 = arith.truncf %11 : vector<256x128xf32> to vector<256x128xbf16>
    %c0_7 = arith.constant 0 : index
    %c0_8 = arith.constant 0 : index
    %13 = vector.load %arg4[%c0_7, %c0_8] : memref<128x128xbf16, #tpu.memory_space<vmem>>, vector<128x128xbf16>
    %cst_9 = arith.constant dense<0.000000e+00> : vector<256x128xf32>
    %14 = tpu.matmul %12, %13, %cst_9 {dimension_numbers = #tpu.dot_dimension_numbers<[1], [0], [0], [1], [0, 0, 1, 1], [], []>} : vector<256x128xbf16>, vector<128x128xbf16>, vector<256x128xf32> -> vector<256x128xf32>
    %c0_10 = arith.constant 0 : index
    %c0_11 = arith.constant 0 : index
    %15 = vector.load %arg5[%c0_10, %c0_11] : memref<1x128xf32, #tpu.memory_space<vmem>>, vector<1x128xf32>
    %16 = vector.broadcast %15 : vector<1x128xf32> to vector<256x128xf32>
    %17 = arith.addf %14, %16 : vector<256x128xf32>
    %18 = arith.addf %1, %17 : vector<256x128xf32>
    %c0_12 = arith.constant 0 : index
    %c0_13 = arith.constant 0 : index
    %19 = vector.load %arg6[%c0_12, %c0_13] : memref<256x128xf32, #tpu.memory_space<vmem>>, vector<256x128xf32>
    tpu.vector_store %arg6[%c0_12, %c0_13], %18 {strides = array<i32>} : memref<256x128xf32, #tpu.memory_space<vmem>>, vector<256x128xf32>,
    return
  }
  func.func @transform_0(%arg0: i32) -> (i32, i32) {
    %c0_i32 = arith.constant 0 : i32
    %c0_i32_0 = arith.constant 0 : i32
    return %arg0, %c0_i32 : i32, i32
  }
  func.func @transform_1(%arg0: i32) -> (i32, i32) {
    %c0_i32 = arith.constant 0 : i32
    %c0_i32_0 = arith.constant 0 : i32
    %c0_i32_1 = arith.constant 0 : i32
    return %c0_i32, %c0_i32_0 : i32, i32
  }
  func.func @transform_2(%arg0: i32) -> (i32, i32) {
    %c0_i32 = arith.constant 0 : i32
    %c0_i32_0 = arith.constant 0 : i32
    %c0_i32_1 = arith.constant 0 : i32
    return %c0_i32, %c0_i32_0 : i32, i32
  }
  func.func @transform_3(%arg0: i32) -> (i32, i32) {
    %c0_i32 = arith.constant 0 : i32
    %c0_i32_0 = arith.constant 0 : i32
    %c0_i32_1 = arith.constant 0 : i32
    return %c0_i32, %c0_i32_0 : i32, i32
  }
  func.func @transform_4(%arg0: i32) -> (i32, i32) {
    %c0_i32 = arith.constant 0 : i32
    %c0_i32_0 = arith.constant 0 : i32
    %c0_i32_1 = arith.constant 0 : i32
    return %c0_i32, %c0_i32_0 : i32, i32
  }
  func.func @transform_5(%arg0: i32) -> (i32, i32) {
    %c0_i32 = arith.constant 0 : i32
    %c0_i32_0 = arith.constant 0 : i32
    return %arg0, %c0_i32 : i32, i32
  }
}

</mosaic_0001>

<bundles_post_ra>
// kernel: tpu_custom_call.1
= control target key start
LH: loop header
LB: loop body
LE: loop exit
PB: predicated region body
PF: predicated region fallthrough
CT: control target
= control target key end

     0   :  { %10 = vsyncpa [#allocation3], 0  ;;  %s2176_s0 = inlined_call_operand.hbm [shape: bf16[512,128], index: 0, kind: input, shape index: {}]   ;;  %s2177_s1 = inlined_call_operand.hbm [shape: bf16[128,128], index: 1, kind: input, shape index: {}]   ;;  %s2178_s2 = inlined_call_operand.vmem [shape: f32[1,128], index: 2, kind: input, shape index: {}]   ;;  %s2179_s3 = inlined_call_operand.hbm [shape: bf16[128,128], index: 3, kind: input, shape index: {}]   ;;  %s2180_s4 = inlined_call_operand.vmem [shape: f32[1,128], index: 4, kind: input, shape index: {}]   ;;  %s2181_s5 = inlined_call_operand.hbm [shape: f32[512,128], index: 5, kind: output, shape index: {}]  }
   0x1   :  { %12 = vsyncpa [#allocation3 + $0x1], 0 }
   0x2   :  { %13 = vsyncpa [#allocation6], 0 }
   0x3   :  { %14 = vsyncpa [#allocation4], 0 }
   0x4   :  { %16 = vsyncpa [#allocation4 + $0x1], 0  ;;  %s1613_s18 = smov 0   ;;  %s1615_s19 = smov 0  }
   0x5   :  { %s1617_s20 = smov 0   ;;  %s1619_s21 = smov 0  }
   0x6 LB: > { %s1634_s22 = sadd.s32 4294967295, %s1573_s21   ;;  %s1069_s23 = sadd.s32 4294967294, %s1573_s21   ;;  %s1573_s21 = sphi %s1619_s21, %s2209_s21   ;;  %s1569_s20 = sphi %s1617_s20, %s2208_s20   ;;  %s1565_s19 = sphi %s1615_s19, %s2207_s19   ;;  %s1561_s18 = sphi %s1613_s18, %s2206_s18  }
   0x7   : > { %p42_p0 = scmp.ne.s32.totalorder %s1565_s19, %s1561_s18  ;;  %p2182_p1 = scmp.eq.s32.totalorder %s1634_s22, 0 }
   0x8   : > { %p156_p3 = scmp.eq.s32.totalorder %s1069_s23, 1  ;;  %p1070_p5 = scmp.ge.s32.totalorder %s1573_s21, 1 }
   0x9   : > { %p1643_p4 = por %p2182_p1, %p42_p0  ;;  %p163_p7 = scmp.lt.s32.totalorder %s1573_s21, 3 }
   0xa   : > { %p1648_p6 = por %p156_p3, %p42_p0  ;;  %s1575_s27 = smov [#allocation5]  }
   0xb   : > { %s2189_s24 = scalar_select %p1643_p4, 1, 0 }
   0xc   : > { %s2190_s25 = scalar_select %p1648_p6, 1, 0 }
   0xd   : > { %p1653_p8 = pnand %p1070_p5, %p163_p7  ;;  %s175_s28 = sshll.u32 %s1575_s27, 4  ;;  %s1657_s28 = int_to_ptr.vmem [resolvable:$true] %s175_s28 }
   0xe   : > { %s1576_s30 = smov [#allocation7]   ;;  %s1417_s9 = scalar_lea.hbm %s2177_s1, 1024 }
   0xf   : > { %p1342_p9 = pneg %p1653_p8  ;;  %s191_s6 = sshll.u32 %s1576_s30, 4  ;;  %s1668_s6 = int_to_ptr.vmem [resolvable:$true] %s191_s6 }
  0x10   : > { %p1418_p12 = scmp.ne.s32.totalorder %s2177_s1, %s1417_s9  ;;  %p1424_p5 = scmp.lt.u32.totalorder %s1417_s9, %s2177_s1 }
  0x11   : > { %p1664_p11 = pnand %p1342_p9, %p2182_p1 }
  0x13   : > { %p1419_p13 = pneg %p1664_p11 }
  0x15   : > { %p1420_p0 = pnand %p1419_p13, %p1418_p12 }
  0x17   : > { %p1421_p3 = pneg %p1420_p0 }
  0x19   : > { %p1426_p7 = pnand %p1424_p5, %p1421_p3 }
  0x1b   : > { %1429 = shalt.err (!%p1426_p7)
}
  0x1c   : > { %s1430_s14 = scalar_lea.vmem %s1657_s28, 1024  ;;  %p1438_p2 = scmp.lt.s32.totalorder %s1657_s28, %s1657_s28 }
  0x1d   : > { %p1431_p9 = scmp.ne.s32.totalorder %s1657_s28, %s1430_s14  ;;  %p1439_p12 = scmp.lt.s32.totalorder %s1430_s14, %s1430_s14 }
  0x1f   : > { %p1433_p10 = pnand %p1431_p9, %p1419_p13  ;;  %p1440_p0 = por %p1439_p12, %p1438_p2 }
  0x21   : > { %p1434_p1 = pneg %p1433_p10 }
  0x23   : > { %p1441_p6 = pnand %p1440_p0, %p1434_p1 }
  0x25   : > { %1444 = shalt.err (!%p1441_p6)
}
  0x26   : > { %s1577_s15 = smov 64   ;;  %s1578_s16 = smov 4  }
  0x27   : > { %1345 = dma.hbm_to_vmem [thread:$0]  (!%p1664_p11), %s2177_s1, 1024, %s1657_s28, [#allocation6], %s1577_s15, %s1577_s15, %s1578_s16  }
  0x28   : > { %s1445_s7 = scalar_lea.hbm %s2179_s3, 1024 }
  0x29   : > { %p1446_p1 = scmp.ne.s32.totalorder %s2179_s3, %s1445_s7  ;;  %p1452_p10 = scmp.lt.u32.totalorder %s1445_s7, %s2179_s3 }
  0x2b   : > { %p1448_p2 = pnand %p1446_p1, %p1419_p13 }
  0x2d   : > { %p1449_p6 = pneg %p1448_p2 }
  0x2f   : > { %p1454_p3 = pnand %p1452_p10, %p1449_p6 }
  0x31   : > { %1457 = shalt.err (!%p1454_p3)
}
  0x32   : > { %s1458_s28 = scalar_lea.vmem %s1668_s6, 1024  ;;  %p1466_p12 = scmp.lt.s32.totalorder %s1668_s6, %s1668_s6 }
  0x33   : > { %p1459_p5 = scmp.ne.s32.totalorder %s1668_s6, %s1458_s28  ;;  %p1467_p0 = scmp.lt.s32.totalorder %s1458_s28, %s1458_s28 }
  0x35   : > { %p1461_p7 = pnand %p1459_p5, %p1419_p13  ;;  %p1468_p1 = por %p1467_p0, %p1466_p12 }
  0x37   : > { %p1462_p9 = pneg %p1461_p7 }
  0x39   : > { %p1469_p2 = pnand %p1468_p1, %p1462_p9 }
  0x3b   : > { %1472 = shalt.err (!%p1469_p2)
}
  0x3c   : > { %1348 = dma.hbm_to_vmem [thread:$0]  (!%p1664_p11), %s2179_s3, 1024, %s1668_s6, [#allocation6], %s1577_s15, %s1577_s15, %s1578_s16  }
  0x3d   : > { %s1729_s29 = sadd.s32 1, %s1573_s21   ;;  %s29_s14 = sadd.s32 1, %s1569_s20 }
  0x3e   : > { %s26_s17 = ssub.s32 %s1573_s21, %s1729_s29  ;;  %p36_p13 = scmp.ne.s32.totalorder %s1569_s20, %s1565_s19 }
  0x3f   : > { %p27_p6 = scmp.eq.s32.totalorder %s26_s17, 0  ;;  %p37_p10 = scmp.eq.s32.totalorder %s1573_s21, 0 }
  0x40   : > { %p2193_p3 = scmp.eq.s32.totalorder %s1634_s22, 1  ;;  %p1359_p7 = scmp.lt.s32.totalorder %s1573_s21, 2 }
  0x41   : > { %s1745_s27 = scalar_select %p27_p6, %s1569_s20, %s29_s14  }
  0x42   : > { %p1739_p5 = por %p2193_p3, %p36_p13  ;;  %p38_p9 = por %p37_p10, %p36_p13 }
  0x43   : > { %s208_s30 = sand.u32 1, %s1569_s20   ;;  %s1105_s6 = sshll.u32 %s1573_s21, 11 }
  0x44   : > { %s2194_s23 = scalar_select %p1739_p5, 1, 0 }
  0x45   : > { %s1074_s7 = sshll.u32 %s208_s30, 7  ;;  %s1752_s10 = scalar_lea.hbm %s2176_s0, %s1105_s6 }
  0x46   : > { %s212_s11 = scalar_lea.vmem [#allocation2], %s1074_s7  ;;  %p1756_p11 = pnand %p1359_p7, %p38_p9 }
  0x47   : > { %s219_s28 = sshll.u32 %s212_s11, 4  ;;  %s1760_s13 = scalar_lea.sflag [#allocation3], %s208_s30  ;;  %s1754_s28 = int_to_ptr.vmem [resolvable:$true] %s219_s28 }
  0x48   : > { %s1473_s14 = scalar_lea.hbm %s1752_s10, 2048  ;;  %p1475_p0 = pneg %p1756_p11 }
  0x49   : > { %p1474_p12 = scmp.ne.s32.totalorder %s1752_s10, %s1473_s14  ;;  %s1478_s6 = scalar_lea.hbm %s2176_s0, 4096 }
  0x4a   : > { %p1479_p13 = scmp.lt.u32.totalorder %s1752_s10, %s2176_s0  ;;  %p1480_p6 = scmp.lt.u32.totalorder %s1478_s6, %s1473_s14 }
  0x4b   : > { %p1476_p1 = pnand %p1475_p0, %p1474_p12  ;;  %p1482_p3 = scmp.lt.u32.totalorder %s1473_s14, %s1752_s10 }
  0x4c   : > { %p1481_p10 = por %p1480_p6, %p1479_p13 }
  0x4d   : > { %p1477_p2 = pneg %p1476_p1 }
  0x4e   : > { %p1483_p7 = por %p1482_p3, %p1481_p10 }
  0x50   : > { %p1484_p9 = pnand %p1483_p7, %p1477_p2 }
  0x52   : > { %1487 = shalt.err (!%p1484_p9)
}
  0x53   : > { %s1488_s30 = scalar_lea.vmem %s1754_s28, 2048  ;;  %s1579_s11 = smov [#allocation2]  }
  0x54   : > { %p1489_p12 = scmp.ne.s32.totalorder %s1754_s28, %s1488_s30  ;;  %s1493_s17 = sshll.u32 %s1579_s11, 4  ;;  %s1494_s17 = int_to_ptr.vmem [resolvable:$false] %s1493_s17 }
  0x55   : > { %s1495_s7 = scalar_lea.vmem %s1494_s17, 4096  ;;  %p1496_p4 = scmp.lt.s32.totalorder %s1754_s28, %s1494_s17 }
  0x56   : > { %p1491_p1 = pnand %p1489_p12, %p1475_p0  ;;  %p1497_p13 = scmp.lt.s32.totalorder %s1495_s7, %s1488_s30 }
  0x58   : > { %p1492_p5 = pneg %p1491_p1  ;;  %p1498_p6 = por %p1497_p13, %p1496_p4 }
  0x5a   : > { %p1499_p10 = pnand %p1498_p6, %p1492_p5 }
  0x5c   : > { %1502 = shalt.err (!%p1499_p10)
}
  0x5d   : > { %1352 = dma.hbm_to_vmem [thread:$0]  (!%p1756_p11), %s1752_s10, 2048, %s1754_s28, %s1760_s13, %s1577_s15, %s1577_s15, %s1578_s16  }
  0x5e   : > { %231 = sbr.rel (%p1653_p8) target bundleno = 650 (0x28a), region = 40  ;;  %s1794_s14 = sand.u32 (!%p1653_p8), 1, %s1565_s19  }
  0x5f   : > { %s1078_s6 = sshll.u32 (!%p1653_p8), %s1794_s14, 7  ;;  %s234_s8 = scalar_lea.sflag (!%p1653_p8), [#allocation3], %s1794_s14 }
  0x60   : > { %s1798_s9 = scalar_lea.vmem (!%p1653_p8), [#allocation2], %s1078_s6  ;;  %p2196_p4 = scmp.ne.s32.totalorder (!%p1653_p8), %s2189_s24, 0 }
  0x65   : > { %1548 = dma.done.wait (%p2196_p4), %s234_s8, 2048  }
  0x66   : > { %1550 = vsyncadd (%p2196_p4), %s234_s8, 4294965248  ;;  %p2197_p5 = scmp.eq.s32.totalorder %s1634_s22, 0 }
  0x68   : > { %1552 = dma.done.wait (%p2197_p5), [#allocation6], 2048   ;;  %p2198_p8 = pmov %p2197_p5 }
  0x69   : > { %v1401_v0 = vld [vmem:[#allocation5] sm:$0xff]   ;;  %v1402_v1 = vld [vmem:[#allocation5 + $0x8] sm:$0xff]   ;;  %v1403_v2 = vld [vmem:[#allocation5 + $0x10] sm:$0xff]   ;;  %s1081_s10 = sshll.u32 %s1794_s14, 8  ;;  %s1106_s12 = sshll.u32 %s1634_s22, 12 }
  0x6a   : > { %1554 = vsyncadd (%p2198_p8), [#allocation6], 4294965248  ;;  %1234 = vmatprep.subr.bf16.mxu0 %v1401_v0  ;;  %v1404_v3 = vld [vmem:[#allocation5 + $0x18] sm:$0xff]   ;;  %v1809_v4 = vld [vmem:[%s1798_s9] sm:$0xff]   ;;  %s2003_s28 = scalar_lea.vmem [#allocation8], %s1081_s10  ;;  %s2125_s22 = scalar_lea.hbm %s2181_s5, %s1106_s12 }
  0x6b   : > { %1235 = vmatpush3.bf16.msra.mxu0 %v1401_v0  ;;  %v1109_v5 = vunpack.c.l.bf16 %v1809_v4  ;;  %v1110_v6 = vunpack.c.h.bf16 %v1809_v4  ;;  %v1405_v9 = vld [vmem:[#allocation5 + $0x20] sm:$0xff]   ;;  %v1406_v12 = vld [vmem:[#allocation5 + $0x28] sm:$0xff]   ;;  %v1407_v14 = vld [vmem:[#allocation5 + $0x30] sm:$0xff]   ;;  %s977_s13 = sshll.u32 %s2003_s28, 4  ;;  %s964_s17 = scalar_lea.sflag [#allocation4], %s1794_s14  ;;  %s2127_s13 = int_to_ptr.vmem [resolvable:$true] %s977_s13 }
  0x6c   : > { %1236 = vmatprep.subr.bf16.mxu0 %v1402_v1  ;;  %v1409_v11 = vld [vmem:[#allocation7] sm:$0xff]   ;;  %v1410_v13 = vld [vmem:[#allocation7 + $0x8] sm:$0xff]   ;;  %v1411_v15 = vld [vmem:[#allocation7 + $0x10] sm:$0xff]   ;;  %s1503_s7 = scalar_lea.vmem %s2127_s13, 4096  ;;  %p2203_p0 = scmp.ne.s32.totalorder %s2194_s23, 0 }
  0x6d   : > { %v339_v7 = vmax.f32 %v1109_v5, 0.0  ;;  %v340_v8 = vmax.f32 %v1110_v6, 0.0  ;;  %1282 = vmatprep.subr.bf16.mxu1 %v1409_v11  ;;  %v1818_v16 = vld [vmem:[%s1798_s9 + $0x8] sm:$0xff]   ;;  %v1821_v17 = vld [vmem:[%s1798_s9 + $0x10] sm:$0xff]   ;;  %v1412_v20 = vld [vmem:[#allocation7 + $0x18] sm:$0xff]   ;;  %p1504_p11 = scmp.ne.s32.totalorder %s2127_s13, %s1503_s7  ;;  %s1580_s6 = smov [#allocation8]  }
  0x6e   : > { %1283 = vmatpush3.bf16.msra.mxu1 %v1409_v11  ;;  %v1113_v18 = vunpack.c.l.bf16 %v1818_v16  ;;  %v1114_v19 = vunpack.c.h.bf16 %v1818_v16  ;;  %v1117_v21 = vunpack.c.l.bf16 %v1821_v17  ;;  %v1118_v22 = vunpack.c.h.bf16 %v1821_v17  ;;  %v1408_v23 = vld [vmem:[#allocation5 + $0x38] sm:$0xff]   ;;  %v1413_v26 = vld [vmem:[#allocation7 + $0x20] sm:$0xff]   ;;  %v1414_v34 = vld [vmem:[#allocation7 + $0x28] sm:$0xff]   ;;  %s1507_s8 = sshll.u32 %s1580_s6, 4  ;;  %s1508_s8 = int_to_ptr.vmem [resolvable:$false] %s1507_s8 }
  0x6f   : > { %1237 = vmatpush3.bf16.msra.mxu0 %v1402_v1  ;;  %v371_v10 = vpack.c.bf16 %v340_v8, %v339_v7  ;;  %1284 = vmatprep.subr.bf16.mxu1 %v1410_v13  ;;  %v1836_v29 = vld [vmem:[%s1798_s9 + $0x18] sm:$0xff]   ;;  %v1839_v30 = vld [vmem:[%s1798_s9 + $0x20] sm:$0xff]   ;;  %v1854_v42 = vld [vmem:[%s1798_s9 + $0x28] sm:$0xff]   ;;  %p1505_p2 = pnand %p1504_p11, %p2203_p0  ;;  %p1510_p7 = scmp.lt.s32.totalorder %s2127_s13, %s1508_s8 }
  0x70   : > { %1238 = vmatprep.subr.bf16.mxu0 %v1403_v2  ;;  %v341_v24 = vmax.f32 %v1113_v18, 0.0  ;;  %v342_v25 = vmax.f32 %v1114_v19, 0.0  ;;  %v343_v27 = vmax.f32 %v1117_v21, 0.0  ;;  %v344_v28 = vmax.f32 %v1118_v22, 0.0  ;;  %v1857_v43 = vld [vmem:[%s1798_s9 + $0x30] sm:$0xff]   ;;  %v1872_v54 = vld [vmem:[%s1798_s9 + $0x38] sm:$0xff]  }
  0x71   : > { %1250 = vmatprep.mubr.bf16.mxu0 %v371_v10  ;;  %v1121_v32 = vunpack.c.l.bf16 %v1836_v29  ;;  %v1122_v33 = vunpack.c.h.bf16 %v1836_v29  ;;  %v1125_v36 = vunpack.c.l.bf16 %v1839_v30  ;;  %v1126_v37 = vunpack.c.h.bf16 %v1839_v30  ;;  %v1875_v55 = vld [vmem:[%s1798_s9 + $0x40] sm:$0xff]   ;;  %p1506_p3 = pneg %p1505_p2 }
  0x72   : > { %1285 = vmatpush3.bf16.msra.mxu1 %v1410_v13  ;;  %v372_v31 = vpack.c.bf16 %v342_v25, %v341_v24  ;;  %v373_v35 = vpack.c.bf16 %v344_v28, %v343_v27  ;;  %v1129_v45 = vunpack.c.l.bf16 %v1854_v42  ;;  %v1130_v46 = vunpack.c.h.bf16 %v1854_v42  ;;  %v1911_v24 = vld [vmem:[%s1798_s9 + $0x60] sm:$0xff]  }
  0x73   : > { %1239 = vmatpush3.bf16.msra.mxu0 %v1403_v2  ;;  %1286 = vmatprep.subr.bf16.mxu1 %v1411_v15  ;;  %v345_v38 = vmax.f32 %v1121_v32, 0.0  ;;  %v346_v39 = vmax.f32 %v1122_v33, 0.0  ;;  %v347_v40 = vmax.f32 %v1125_v36, 0.0  ;;  %v348_v41 = vmax.f32 %v1126_v37, 0.0  ;;  %v1890_v2 = vld [vmem:[%s1798_s9 + $0x48] sm:$0xff]  }
  0x74   : > { %1240 = vmatprep.subr.bf16.mxu0 %v1404_v3  ;;  %v1133_v48 = vunpack.c.l.bf16 %v1857_v43  ;;  %v1134_v49 = vunpack.c.h.bf16 %v1857_v43  ;;  %v349_v50 = vmax.f32 %v1129_v45, 0.0  ;;  %v350_v51 = vmax.f32 %v1130_v46, 0.0 }
  0x75   : > { %v374_v44 = vpack.c.bf16 %v346_v39, %v345_v38  ;;  %v375_v47 = vpack.c.bf16 %v348_v41, %v347_v40  ;;  %v1137_v57 = vunpack.c.l.bf16 %v1872_v54  ;;  %v1138_v58 = vunpack.c.h.bf16 %v1872_v54  ;;  %v1926_v41 = vld [vmem:[%s1798_s9 + $0x68] sm:$0xff]  }
  0x76   : > { %1287 = vmatpush3.bf16.msra.mxu1 %v1411_v15  ;;  %v351_v52 = vmax.f32 %v1133_v48, 0.0  ;;  %v352_v53 = vmax.f32 %v1134_v49, 0.0  ;;  %v376_v56 = vpack.c.bf16 %v350_v51, %v349_v50  ;;  %v1141_v60 = vunpack.c.l.bf16 %v1875_v55 }
  0x77   : > { %1241 = vmatpush3.bf16.msra.mxu0 %v1404_v3  ;;  %1288 = vmatprep.subr.bf16.mxu1 %v1412_v20  ;;  %v1142_v61 = vunpack.c.h.bf16 %v1875_v55  ;;  %v353_v62 = vmax.f32 %v1137_v57, 0.0  ;;  %v354_v63 = vmax.f32 %v1138_v58, 0.0  ;;  %v1893_v3 = vld [vmem:[%s1798_s9 + $0x50] sm:$0xff]   ;;  %v1145_v8 = vunpack.c.l.bf16 %v1890_v2 }
  0x78   : > { %1242 = vmatprep.subr.bf16.mxu0 %v1405_v9  ;;  %v377_v59 = vpack.c.bf16 %v352_v53, %v351_v52  ;;  %v355_v0 = vmax.f32 %v1141_v60, 0.0  ;;  %v1149_v11 = vunpack.c.l.bf16 %v1893_v3  ;;  %v1161_v50 = vunpack.c.l.bf16 %v1926_v41 }
  0x79   : > { %v356_v1 = vmax.f32 %v1142_v61, 0.0  ;;  %v378_v7 = vpack.c.bf16 %v354_v63, %v353_v62  ;;  %v357_v13 = vmax.f32 %v1145_v8, 0.0  ;;  %v1162_v51 = vunpack.c.h.bf16 %v1926_v41 }
  0x7a   : > { %1289 = vmatpush3.bf16.msra.mxu1 %v1412_v20  ;;  %v359_v15 = vmax.f32 %v1149_v11, 0.0 }
  0x7b   : > { %1243 = vmatpush3.bf16.msra.mxu0 %v1405_v9  ;;  %1290 = vmatprep.subr.bf16.mxu1 %v1413_v26  ;;  %v1146_v9 = vunpack.c.h.bf16 %v1890_v2  ;;  %v379_v10 = vpack.c.bf16 %v356_v1, %v355_v0  ;;  %v366_v62 = vmax.f32 %v1162_v51, 0.0  ;;  %v1944_v1 = vld [vmem:[%s1798_s9 + $0x78] sm:$0xff]  }
  0x7c   : > { %1244 = vmatprep.subr.bf16.mxu0 %v1406_v12  ;;  %v2199_v41 = vunpack.c.l.bf16 %v1944_v1 }
  0x7e   : > { %1291 = vmatpush3.bf16.msra.mxu1 %v1413_v26 }
  0x7f   : > { %1245 = vmatpush3.bf16.msra.mxu0 %v1406_v12  ;;  %1292 = vmatprep.subr.bf16.mxu1 %v1414_v34  ;;  %v1150_v12 = vunpack.c.h.bf16 %v1893_v3 }
  0x80   : > { %1246 = vmatprep.subr.bf16.mxu0 %v1407_v14 }
  0x81   : > { %v360_v20 = vmax.f32 %v1150_v12, 0.0 }
  0x82   : > { %1293 = vmatpush3.bf16.msra.mxu1 %v1414_v34  ;;  %v1158_v34 = vunpack.c.h.bf16 %v1911_v24 }
  0x83   : > { %1247 = vmatpush3.bf16.msra.mxu0 %v1407_v14  ;;  %v358_v14 = vmax.f32 %v1146_v9, 0.0  ;;  %v381_v28 = vpack.c.bf16 %v360_v20, %v359_v15 }
  0x84   : > { %1248 = vmatprep.subr.bf16.mxu0 %v1408_v23  ;;  %v364_v40 = vmax.f32 %v1158_v34, 0.0 }
  0x85   : > { %v380_v25 = vpack.c.bf16 %v358_v14, %v357_v13  ;;  %v2186_v13 = vunpack.c.h.bf16 %v1944_v1 }
  0x87   : > { %1249 = vmatpush3.bf16.msra.mxu0 %v1408_v23  ;;  %v1908_v23 = vld [vmem:[%s1798_s9 + $0x58] sm:$0xff]   ;;  %v370_v20 = vmax.f32 %v2186_v13, 0.0 }
  0x88   : > { %v1153_v26 = vunpack.c.l.bf16 %v1908_v23  ;;  %v1154_v27 = vunpack.c.h.bf16 %v1908_v23 }
  0x8a   : > { %1251 = vmatmul.mubr.bf16.vlgmr.msra.gmra.mrb[0].mxu0 %v372_v31  ;;  %v1157_v31 = vunpack.c.l.bf16 %v1911_v24  ;;  %v362_v38 = vmax.f32 %v1154_v27, 0.0 }
  0x8b   : > { %1254 = vmatprep.mubr.bf16.mxu0 %v373_v35  ;;  %v361_v35 = vmax.f32 %v1153_v26, 0.0 }
  0x8c   : > { %v363_v39 = vmax.f32 %v1157_v31, 0.0 }
  0x8e   : > { %v383_v52 = vpack.c.bf16 %v364_v40, %v363_v39 }
  0x92   : > { %1255 = vmatmul.mubr.bf16.gmra.mrb[4].mxu0 %v374_v44  ;;  %v1929_v44 = vld [vmem:[%s1798_s9 + $0x70] sm:$0xff]   ;;  %s1509_s9 = scalar_lea.vmem %s1508_s8, 8192 }
  0x93   : > { %1258 = vmatprep.mubr.bf16.mxu0 %v375_v47  ;;  %v382_v47 = vpack.c.bf16 %v362_v38, %v361_v35  ;;  %v2187_v53 = vunpack.c.l.bf16 %v1929_v44  ;;  %v1416_v35 = vld [vmem:[#allocation7 + $0x38] sm:$0xff]   ;;  %v1955_v38 = vld [vmem:[%s2178_s2] ss:$0 sm:$0xff]  ;;  %p1511_p9 = scmp.lt.s32.totalorder %s1509_s9, %s1503_s7 }
  0x95   : > { %v367_v63 = vmax.f32 %v2187_v53, 0.0  ;;  %p1512_p12 = por %p1511_p9, %p1510_p7 }
  0x97   : > { %p1513_p1 = pnand %p1512_p12, %p1506_p3 }
  0x9a   : > { %1259 = vmatmul.mubr.bf16.gmra.mrb[8].mxu0 %v376_v56  ;;  %v2185_v56 = vunpack.c.h.bf16 %v1929_v44 }
  0x9b   : > { %1262 = vmatprep.mubr.bf16.mxu0 %v377_v59  ;;  %v365_v59 = vmax.f32 %v1161_v50, 0.0 }
  0x9c   : > { %v368_v0 = vmax.f32 %v2185_v56, 0.0 }
  0x9e   : > { %v385_v14 = vpack.c.bf16 %v368_v0, %v367_v63 }
  0xa2   : > { %1263 = vmatmul.mubr.bf16.gmra.mrb[12].mxu0 %v378_v7  ;;  %v384_v7 = vpack.c.bf16 %v366_v62, %v365_v59 }
  0xa3   : > { %1266 = vmatprep.mubr.bf16.mxu0 %v379_v10  ;;  %v2188_v10 = vunpack.c.l.bf16 %v1944_v1 }
  0xa5   : > { %v369_v15 = vmax.f32 %v2188_v10, 0.0 }
  0xaa   : > { %1267 = vmatmul.mubr.bf16.gmra.mrb[16].mxu0 %v380_v25  ;;  %v386_v25 = vpack.c.bf16 %v370_v20, %v369_v15 }
  0xab   : > { %1270 = vmatprep.mubr.bf16.mxu0 %v381_v28  ;;  %v1415_v28 = vld [vmem:[#allocation7 + $0x30] sm:$0xff]  }
  0xac   : > { %1294 = vmatprep.subr.bf16.mxu1 %v1415_v28 }
  0xad   : > { %1295 = vmatpush3.bf16.msra.mxu1 %v1415_v28 }
  0xae   : > { %1296 = vmatprep.subr.bf16.mxu1 %v1416_v35 }
  0xb1   : > { %1297 = vmatpush3.bf16.msra.mxu1 %v1416_v35 }
  0xb2   : > { %1271 = vmatmul.mubr.bf16.gmra.mrb[20].mxu0 %v382_v47 }
  0xb3   : > { %1274 = vmatprep.mubr.bf16.mxu0 %v383_v52 }
  0xba   : > { %1275 = vmatmul.mubr.bf16.gmra.mrb[24].mxu0 %v384_v7 }
  0xbb   : > { %1278 = vmatprep.mubr.bf16.mxu0 %v385_v14 }
  0xc2   : > { %1279 = vmatmul.mubr.bf16.gmra.mrb[28].mxu0 %v386_v25 }
 0x15d   : > { %v1252_v39 = vpop.f32.mrb[0].mxu0 }
 0x15e   : > { %v501_v40 = vadd.f32 %v1252_v39, %v1955_v38  ;;  %v492_v47 = vpop.f32.mrb[1].mxu0 }
 0x15f   : > { %v493_v52 = vadd.f32 %v1955_v38, %v492_v47  ;;  %v1253_v59 = vpop.f32.mrb[2].mxu0 }
 0x160   : > { %v504_v62 = vadd.f32 %v1253_v59, %v1955_v38  ;;  %v495_v63 = vpop.f32.mrb[3].mxu0  ;;  %v621_v7 = vmax.f32 %v501_v40, 0.0 }
 0x161   : > { %v496_v0 = vadd.f32 %v1955_v38, %v495_v63  ;;  %v619_v15 = vmax.f32 %v493_v52, 0.0 }
 0x162   : > { %v622_v14 = vmax.f32 %v504_v62, 0.0 }
 0x163   : > { %v620_v20 = vmax.f32 %v496_v0, 0.0 }
 0x164   : > { %v652_v25 = vpack.c.bf16 %v622_v14, %v621_v7 }
 0x165   : > { %v1256_v28 = vpop.f32.mrb[4].mxu0  ;;  %v651_v35 = vpack.c.bf16 %v620_v20, %v619_v15 }
 0x166   : > { %v517_v56 = vadd.f32 %v1256_v28, %v1955_v38  ;;  %v508_v13 = vpop.f32.mrb[5].mxu0 }
 0x167   : > { %v509_v39 = vadd.f32 %v1955_v38, %v508_v13  ;;  %v1257_v53 = vpop.f32.mrb[6].mxu0  ;;  %1298 = vmatprep.mubr.bf16.mxu1 %v651_v35 }
 0x168   : > { %v520_v47 = vadd.f32 %v1257_v53, %v1955_v38  ;;  %v511_v59 = vpop.f32.mrb[7].mxu0  ;;  %1299 = vmatmul.mubr.bf16.vlgmr.msra.gmra.mrb[0].mxu1 %v652_v25  ;;  %v625_v40 = vmax.f32 %v517_v56, 0.0 }
 0x169   : > { %v512_v63 = vadd.f32 %v1955_v38, %v511_v59  ;;  %v623_v52 = vmax.f32 %v509_v39, 0.0 }
 0x16a   : > { %v626_v62 = vmax.f32 %v520_v47, 0.0 }
 0x16b   : > { %v624_v0 = vmax.f32 %v512_v63, 0.0 }
 0x16c   : > { %v654_v7 = vpack.c.bf16 %v626_v62, %v625_v40 }
 0x16d   : > { %v653_v14 = vpack.c.bf16 %v624_v0, %v623_v52  ;;  %v1260_v15 = vpop.f32.mrb[8].mxu0 }
 0x16e   : > { %v533_v20 = vadd.f32 %v1260_v15, %v1955_v38  ;;  %v524_v28 = vpop.f32.mrb[9].mxu0 }
 0x16f   : > { %v525_v13 = vadd.f32 %v1955_v38, %v524_v28  ;;  %v1261_v10 = vpop.f32.mrb[10].mxu0  ;;  %1302 = vmatprep.mubr.bf16.mxu1 %v653_v14 }
 0x170   : > { %v536_v53 = vadd.f32 %v1261_v10, %v1955_v38  ;;  %v527_v35 = vpop.f32.mrb[11].mxu0  ;;  %1303 = vmatmul.mubr.bf16.gmra.mrb[4].mxu1 %v654_v7  ;;  %v629_v56 = vmax.f32 %v533_v20, 0.0 }
 0x171   : > { %v528_v25 = vadd.f32 %v1955_v38, %v527_v35  ;;  %v627_v39 = vmax.f32 %v525_v13, 0.0 }
 0x172   : > { %v630_v47 = vmax.f32 %v536_v53, 0.0 }
 0x173   : > { %v628_v59 = vmax.f32 %v528_v25, 0.0 }
 0x174   : > { %v656_v63 = vpack.c.bf16 %v630_v47, %v629_v56 }
 0x175   : > { %v655_v40 = vpack.c.bf16 %v628_v59, %v627_v39  ;;  %v1264_v62 = vpop.f32.mrb[12].mxu0 }
 0x176   : > { %v549_v52 = vadd.f32 %v1264_v62, %v1955_v38  ;;  %v540_v0 = vpop.f32.mrb[13].mxu0 }
 0x177   : > { %v541_v15 = vadd.f32 %v1955_v38, %v540_v0  ;;  %v1265_v28 = vpop.f32.mrb[14].mxu0  ;;  %1306 = vmatprep.mubr.bf16.mxu1 %v655_v40 }
 0x178   : > { %v552_v10 = vadd.f32 %v1265_v28, %v1955_v38  ;;  %v543_v14 = vpop.f32.mrb[15].mxu0  ;;  %1307 = vmatmul.mubr.bf16.gmra.mrb[8].mxu1 %v656_v63  ;;  %v633_v20 = vmax.f32 %v549_v52, 0.0 }
 0x179   : > { %v544_v7 = vadd.f32 %v1955_v38, %v543_v14  ;;  %v631_v13 = vmax.f32 %v541_v15, 0.0 }
 0x17a   : > { %v634_v53 = vmax.f32 %v552_v10, 0.0 }
 0x17b   : > { %v632_v35 = vmax.f32 %v544_v7, 0.0 }
 0x17c   : > { %v658_v25 = vpack.c.bf16 %v634_v53, %v633_v20 }
 0x17d   : > { %v657_v56 = vpack.c.bf16 %v632_v35, %v631_v13  ;;  %v1268_v47 = vpop.f32.mrb[16].mxu0 }
 0x17e   : > { %v565_v39 = vadd.f32 %v1268_v47, %v1955_v38  ;;  %v556_v59 = vpop.f32.mrb[17].mxu0 }
 0x17f   : > { %v557_v62 = vadd.f32 %v1955_v38, %v556_v59  ;;  %v1269_v0 = vpop.f32.mrb[18].mxu0  ;;  %1310 = vmatprep.mubr.bf16.mxu1 %v657_v56 }
 0x180   : > { %v568_v40 = vadd.f32 %v1269_v0, %v1955_v38  ;;  %v559_v28 = vpop.f32.mrb[19].mxu0  ;;  %1311 = vmatmul.mubr.bf16.gmra.mrb[12].mxu1 %v658_v25  ;;  %v637_v52 = vmax.f32 %v565_v39, 0.0 }
 0x181   : > { %v560_v63 = vadd.f32 %v1955_v38, %v559_v28  ;;  %v635_v15 = vmax.f32 %v557_v62, 0.0 }
 0x182   : > { %v638_v10 = vmax.f32 %v568_v40, 0.0 }
 0x183   : > { %v636_v14 = vmax.f32 %v560_v63, 0.0 }
 0x184   : > { %v660_v7 = vpack.c.bf16 %v638_v10, %v637_v52 }
 0x185   : > { %v659_v20 = vpack.c.bf16 %v636_v14, %v635_v15  ;;  %v1272_v53 = vpop.f32.mrb[20].mxu0 }
 0x186   : > { %v581_v13 = vadd.f32 %v1272_v53, %v1955_v38  ;;  %v572_v35 = vpop.f32.mrb[21].mxu0 }
 0x187   : > { %v573_v47 = vadd.f32 %v1955_v38, %v572_v35  ;;  %v1273_v59 = vpop.f32.mrb[22].mxu0  ;;  %1314 = vmatprep.mubr.bf16.mxu1 %v659_v20 }
 0x188   : > { %v584_v56 = vadd.f32 %v1273_v59, %v1955_v38  ;;  %v575_v0 = vpop.f32.mrb[23].mxu0  ;;  %1315 = vmatmul.mubr.bf16.gmra.mrb[16].mxu1 %v660_v7  ;;  %v641_v39 = vmax.f32 %v581_v13, 0.0 }
 0x189   : > { %v576_v25 = vadd.f32 %v1955_v38, %v575_v0  ;;  %v639_v62 = vmax.f32 %v573_v47, 0.0 }
 0x18a   : > { %v642_v40 = vmax.f32 %v584_v56, 0.0 }
 0x18b   : > { %v640_v28 = vmax.f32 %v576_v25, 0.0 }
 0x18c   : > { %v662_v63 = vpack.c.bf16 %v642_v40, %v641_v39 }
 0x18d   : > { %v661_v52 = vpack.c.bf16 %v640_v28, %v639_v62  ;;  %v1276_v10 = vpop.f32.mrb[24].mxu0 }
 0x18e   : > { %v597_v15 = vadd.f32 %v1276_v10, %v1955_v38  ;;  %v588_v14 = vpop.f32.mrb[25].mxu0 }
 0x18f   : > { %v589_v53 = vadd.f32 %v1955_v38, %v588_v14  ;;  %v1277_v35 = vpop.f32.mrb[26].mxu0  ;;  %1318 = vmatprep.mubr.bf16.mxu1 %v661_v52 }
 0x190   : > { %v600_v20 = vadd.f32 %v1277_v35, %v1955_v38  ;;  %v591_v59 = vpop.f32.mrb[27].mxu0  ;;  %1319 = vmatmul.mubr.bf16.gmra.mrb[20].mxu1 %v662_v63  ;;  %v645_v13 = vmax.f32 %v597_v15, 0.0 }
 0x191   : > { %v592_v7 = vadd.f32 %v1955_v38, %v591_v59  ;;  %v643_v47 = vmax.f32 %v589_v53, 0.0 }
 0x192   : > { %v646_v56 = vmax.f32 %v600_v20, 0.0 }
 0x193   : > { %v644_v0 = vmax.f32 %v592_v7, 0.0 }
 0x194   : > { %v664_v25 = vpack.c.bf16 %v646_v56, %v645_v13  ;;  %v1992_v56 = vld [vmem:[%s2180_s4] ss:$0 sm:$0xff] }
 0x195   : > { %v663_v39 = vpack.c.bf16 %v644_v0, %v643_v47  ;;  %v1280_v40 = vpop.f32.mrb[28].mxu0 }
 0x196   : > { %v613_v62 = vadd.f32 %v1280_v40, %v1955_v38  ;;  %v604_v28 = vpop.f32.mrb[29].mxu0 }
 0x197   : > { %v605_v10 = vadd.f32 %v1955_v38, %v604_v28  ;;  %v1281_v52 = vpop.f32.mrb[30].mxu0  ;;  %1322 = vmatprep.mubr.bf16.mxu1 %v663_v39 }
 0x198   : > { %v616_v14 = vadd.f32 %v1281_v52, %v1955_v38  ;;  %v607_v63 = vpop.f32.mrb[31].mxu0  ;;  %1323 = vmatmul.mubr.bf16.gmra.mrb[24].mxu1 %v664_v25  ;;  %v649_v35 = vmax.f32 %v613_v62, 0.0 }
 0x199   : > { %v608_v15 = vadd.f32 %v1955_v38, %v607_v63  ;;  %v647_v20 = vmax.f32 %v605_v10, 0.0 }
 0x19a   : > { %v650_v53 = vmax.f32 %v616_v14, 0.0 }
 0x19b   : > { %v648_v59 = vmax.f32 %v608_v15, 0.0 }
 0x19c   : > { %v666_v7 = vpack.c.bf16 %v650_v53, %v649_v35 }
 0x19d   : > { %v665_v13 = vpack.c.bf16 %v648_v59, %v647_v20 }
 0x19f   : > { %1326 = vmatprep.mubr.bf16.mxu1 %v665_v13 }
 0x1a0   : > { %1327 = vmatmul.mubr.bf16.gmra.mrb[28].mxu1 %v666_v7 }
 0x23b   : > { %v1300_v47 = vpop.f32.mrb[0].mxu1 }
 0x23c   : > { %v781_v0 = vadd.f32 %v1300_v47, %v1992_v56  ;;  %v772_v25 = vpop.f32.mrb[1].mxu1 }
 0x23d   : > { %v773_v38 = vadd.f32 %v1992_v56, %v772_v25  ;;  %v1301_v39 = vpop.f32.mrb[2].mxu1 }
 0x23e   : > { %v901_v40 = vadd.f32 %v1113_v18, %v781_v0  ;;  %v784_v62 = vadd.f32 %v1301_v39, %v1992_v56  ;;  %v775_v28 = vpop.f32.mrb[3].mxu1 }
 0x23f   : > { %v899_v10 = vadd.f32 %v1109_v5, %v773_v38  ;;  %v776_v52 = vadd.f32 %v1992_v56, %v775_v28 }
 0x240   : > { %933 = vst [vmem:[%s2003_s28 + $0x10] sm:$0xff] %v901_v40  ;;  %v902_v14 = vadd.f32 %v1114_v19, %v784_v62 }
 0x241   : > { %931 = vst [vmem:[%s2003_s28] sm:$0xff] %v899_v10  ;;  %v900_v18 = vadd.f32 %v1110_v6, %v776_v52 }
 0x242   : > { %934 = vst [vmem:[%s2003_s28 + $0x18] sm:$0xff] %v902_v14 }
 0x243   : > { %932 = vst [vmem:[%s2003_s28 + $0x8] sm:$0xff] %v900_v18  ;;  %v1304_v5 = vpop.f32.mrb[4].mxu1 }
 0x244   : > { %v797_v63 = vadd.f32 %v1304_v5, %v1992_v56  ;;  %v788_v15 = vpop.f32.mrb[5].mxu1 }
 0x245   : > { %v789_v35 = vadd.f32 %v1992_v56, %v788_v15  ;;  %v1305_v53 = vpop.f32.mrb[6].mxu1 }
 0x246   : > { %v905_v16 = vadd.f32 %v1121_v32, %v797_v63  ;;  %v800_v19 = vadd.f32 %v1305_v53, %v1992_v56  ;;  %v791_v20 = vpop.f32.mrb[7].mxu1 }
 0x247   : > { %v903_v4 = vadd.f32 %v1117_v21, %v789_v35  ;;  %v792_v6 = vadd.f32 %v1992_v56, %v791_v20 }
 0x248   : > { %937 = vst [vmem:[%s2003_s28 + $0x30] sm:$0xff] %v905_v16  ;;  %v906_v59 = vadd.f32 %v1122_v33, %v800_v19 }
 0x249   : > { %935 = vst [vmem:[%s2003_s28 + $0x20] sm:$0xff] %v903_v4  ;;  %v904_v7 = vadd.f32 %v1118_v22, %v792_v6 }
 0x24a   : > { %938 = vst [vmem:[%s2003_s28 + $0x38] sm:$0xff] %v906_v59 }
 0x24b   : > { %936 = vst [vmem:[%s2003_s28 + $0x28] sm:$0xff] %v904_v7  ;;  %v1308_v32 = vpop.f32.mrb[8].mxu1 }
 0x24c   : > { %v813_v13 = vadd.f32 %v1308_v32, %v1992_v56  ;;  %v804_v21 = vpop.f32.mrb[9].mxu1 }
 0x24d   : > { %v805_v47 = vadd.f32 %v1992_v56, %v804_v21  ;;  %v1309_v0 = vpop.f32.mrb[10].mxu1 }
 0x24e   : > { %v909_v29 = vadd.f32 %v1129_v45, %v813_v13  ;;  %v816_v33 = vadd.f32 %v1309_v0, %v1992_v56  ;;  %v807_v25 = vpop.f32.mrb[11].mxu1 }
 0x24f   : > { %v907_v17 = vadd.f32 %v1125_v36, %v805_v47  ;;  %v808_v22 = vadd.f32 %v1992_v56, %v807_v25 }
 0x250   : > { %941 = vst [vmem:[%s2003_s28 + $0x50] sm:$0xff] %v909_v29  ;;  %v910_v38 = vadd.f32 %v1130_v46, %v816_v33 }
 0x251   : > { %939 = vst [vmem:[%s2003_s28 + $0x40] sm:$0xff] %v907_v17  ;;  %v908_v39 = vadd.f32 %v1126_v37, %v808_v22  ;;  %v2200_v17 = vunpack.c.l.bf16 %v1929_v44 }
 0x252   : > { %942 = vst [vmem:[%s2003_s28 + $0x58] sm:$0xff] %v910_v38 }
 0x253   : > { %940 = vst [vmem:[%s2003_s28 + $0x48] sm:$0xff] %v908_v39  ;;  %v1312_v45 = vpop.f32.mrb[12].mxu1  ;;  %v2201_v39 = vunpack.c.h.bf16 %v1944_v1 }
 0x254   : > { %v829_v40 = vadd.f32 %v1312_v45, %v1992_v56  ;;  %v820_v36 = vpop.f32.mrb[13].mxu1 }
 0x255   : > { %v821_v62 = vadd.f32 %v1992_v56, %v820_v36  ;;  %v1313_v28 = vpop.f32.mrb[14].mxu1 }
 0x256   : > { %v913_v42 = vadd.f32 %v1137_v57, %v829_v40  ;;  %v832_v46 = vadd.f32 %v1313_v28, %v1992_v56  ;;  %v823_v10 = vpop.f32.mrb[15].mxu1  ;;  %v2202_v40 = vunpack.c.h.bf16 %v1929_v44 }
 0x257   : > { %v911_v30 = vadd.f32 %v1133_v48, %v821_v62  ;;  %v824_v37 = vadd.f32 %v1992_v56, %v823_v10 }
 0x258   : > { %945 = vst [vmem:[%s2003_s28 + $0x70] sm:$0xff] %v913_v42  ;;  %v914_v52 = vadd.f32 %v1138_v58, %v832_v46 }
 0x259   : > { %943 = vst [vmem:[%s2003_s28 + $0x60] sm:$0xff] %v911_v30  ;;  %v912_v14 = vadd.f32 %v1134_v49, %v824_v37 }
 0x25a   : > { %946 = vst [vmem:[%s2003_s28 + $0x78] sm:$0xff] %v914_v52 }
 0x25b   : > { %944 = vst [vmem:[%s2003_s28 + $0x68] sm:$0xff] %v912_v14  ;;  %v1316_v57 = vpop.f32.mrb[16].mxu1 }
 0x25c   : > { %v845_v18 = vadd.f32 %v1316_v57, %v1992_v56  ;;  %v836_v48 = vpop.f32.mrb[17].mxu1 }
 0x25d   : > { %v837_v5 = vadd.f32 %v1992_v56, %v836_v48  ;;  %v1317_v63 = vpop.f32.mrb[18].mxu1 }
 0x25e   : > { %v917_v54 = vadd.f32 %v1145_v8, %v845_v18  ;;  %v848_v58 = vadd.f32 %v1317_v63, %v1992_v56  ;;  %v839_v15 = vpop.f32.mrb[19].mxu1 }
 0x25f   : > { %v915_v43 = vadd.f32 %v1141_v60, %v837_v5  ;;  %v840_v49 = vadd.f32 %v1992_v56, %v839_v15 }
 0x260   : > { %949 = vst [vmem:[%s2003_s28 + $0x90] sm:$0xff] %v917_v54  ;;  %v918_v35 = vadd.f32 %v1146_v9, %v848_v58 }
 0x261   : > { %947 = vst [vmem:[%s2003_s28 + $0x80] sm:$0xff] %v915_v43  ;;  %v916_v53 = vadd.f32 %v1142_v61, %v840_v49 }
 0x262   : > { %950 = vst [vmem:[%s2003_s28 + $0x98] sm:$0xff] %v918_v35 }
 0x263   : > { %948 = vst [vmem:[%s2003_s28 + $0x88] sm:$0xff] %v916_v53  ;;  %v1320_v8 = vpop.f32.mrb[20].mxu1 }
 0x264   : > { %v861_v16 = vadd.f32 %v1320_v8, %v1992_v56  ;;  %v852_v60 = vpop.f32.mrb[21].mxu1 }
 0x265   : > { %v853_v19 = vadd.f32 %v1992_v56, %v852_v60  ;;  %v1321_v20 = vpop.f32.mrb[22].mxu1 }
 0x266   : > { %v921_v2 = vadd.f32 %v1153_v26, %v861_v16  ;;  %v864_v9 = vadd.f32 %v1321_v20, %v1992_v56  ;;  %v855_v4 = vpop.f32.mrb[23].mxu1 }
 0x267   : > { %v919_v55 = vadd.f32 %v1149_v11, %v853_v19  ;;  %v856_v61 = vadd.f32 %v1992_v56, %v855_v4 }
 0x268   : > { %953 = vst [vmem:[%s2003_s28 + $0xb0] sm:$0xff] %v921_v2  ;;  %v922_v6 = vadd.f32 %v1154_v27, %v864_v9 }
 0x269   : > { %951 = vst [vmem:[%s2003_s28 + $0xa0] sm:$0xff] %v919_v55  ;;  %v920_v59 = vadd.f32 %v1150_v12, %v856_v61 }
 0x26a   : > { %954 = vst [vmem:[%s2003_s28 + $0xb8] sm:$0xff] %v922_v6 }
 0x26b   : > { %952 = vst [vmem:[%s2003_s28 + $0xa8] sm:$0xff] %v920_v59  ;;  %v1324_v26 = vpop.f32.mrb[24].mxu1 }
 0x26c   : > { %v877_v7 = vadd.f32 %v1324_v26, %v1992_v56  ;;  %v868_v11 = vpop.f32.mrb[25].mxu1 }
 0x26d   : > { %v869_v32 = vadd.f32 %v1992_v56, %v868_v11  ;;  %v1325_v13 = vpop.f32.mrb[26].mxu1 }
 0x26e   : > { %v925_v23 = vadd.f32 %v1161_v50, %v877_v7  ;;  %v880_v27 = vadd.f32 %v1325_v13, %v1992_v56  ;;  %v871_v3 = vpop.f32.mrb[27].mxu1 }
 0x26f   : > { %v923_v12 = vadd.f32 %v1157_v31, %v869_v32  ;;  %v872_v21 = vadd.f32 %v1992_v56, %v871_v3 }
 0x270   : > { %957 = vst [vmem:[%s2003_s28 + $0xd0] sm:$0xff] %v925_v23  ;;  %v926_v47 = vadd.f32 %v1162_v51, %v880_v27 }
 0x271   : > { %955 = vst [vmem:[%s2003_s28 + $0xc0] sm:$0xff] %v923_v12  ;;  %v924_v0 = vadd.f32 %v1158_v34, %v872_v21 }
 0x272   : > { %958 = vst [vmem:[%s2003_s28 + $0xd8] sm:$0xff] %v926_v47 }
 0x273   : > { %956 = vst [vmem:[%s2003_s28 + $0xc8] sm:$0xff] %v924_v0  ;;  %v1328_v50 = vpop.f32.mrb[28].mxu1 }
 0x274   : > { %v893_v29 = vadd.f32 %v1328_v50, %v1992_v56  ;;  %v884_v33 = vpop.f32.mrb[29].mxu1 }
 0x275   : > { %v885_v31 = vadd.f32 %v1992_v56, %v884_v33  ;;  %v1329_v25 = vpop.f32.mrb[30].mxu1 }
 0x276   : > { %v929_v24 = vadd.f32 %v2199_v41, %v893_v29  ;;  %v896_v34 = vadd.f32 %v1329_v25, %v1992_v56  ;;  %v887_v51 = vpop.f32.mrb[31].mxu1 }
 0x277   : > { %v927_v22 = vadd.f32 %v2200_v17, %v885_v31  ;;  %v888_v38 = vadd.f32 %v1992_v56, %v887_v51 }
 0x278   : > { %961 = vst [vmem:[%s2003_s28 + $0xf0] sm:$0xff] %v929_v24  ;;  %v930_v45 = vadd.f32 %v2201_v39, %v896_v34 }
 0x279   : > { %959 = vst [vmem:[%s2003_s28 + $0xe0] sm:$0xff] %v927_v22  ;;  %v928_v36 = vadd.f32 %v2202_v40, %v888_v38 }
 0x27a   : > { %962 = vst [vmem:[%s2003_s28 + $0xf8] sm:$0xff] %v930_v45 }
 0x27b   : > { %960 = vst [vmem:[%s2003_s28 + $0xe8] sm:$0xff] %v928_v36 }
 0x27c   : > { %1516 = shalt.err (!%p1513_p1)
}
 0x27d   : > { %s1517_s24 = scalar_lea.hbm %s2125_s22, 4096  ;;  %s1521_s16 = scalar_lea.hbm %s2181_s5, 8192 }
 0x27e   : > { %p1518_p13 = scmp.ne.s32.totalorder %s2125_s22, %s1517_s24  ;;  %p1522_p4 = scmp.lt.u32.totalorder %s2125_s22, %s2181_s5 }
 0x27f   : > { %p1523_p5 = scmp.lt.u32.totalorder %s1521_s16, %s1517_s24  ;;  %p1525_p11 = scmp.lt.u32.totalorder %s1517_s24, %s2125_s22 }
 0x280   : > { %p1519_p6 = pnand %p1518_p13, %p2203_p0 }
 0x281   : > { %p1524_p8 = por %p1523_p5, %p1522_p4 }
 0x282   : > { %p1520_p10 = pneg %p1519_p6 }
 0x283   : > { %p1526_p2 = por %p1525_p11, %p1524_p8 }
 0x285   : > { %p1527_p3 = pnand %p1526_p2, %p1520_p10 }
 0x287   : > { %1530 = shalt.err (!%p1527_p3)
}
 0x288   : > { %s1581_s12 = smov 128   ;;  %s1582_s30 = smov 8  }
 0x289   : > { %1340 = dma.vmem_to_hbm [thread:$0]  (%p2203_p0), %s2127_s13, 4096, %s2125_s22, %s964_s17, %s1581_s12, %s1581_s12, %s1582_s30  }
 0x28a PF: > { %s992_s11 = sand.u32 1, %s1561_s18   ;;  %p2204_p7 = scmp.ne.s32.totalorder %s2190_s25, 0 }
 0x28b   : > { %p2205_p9 = scmp.ge.s32.totalorder %s1573_s21, 2  ;;  %s993_s7 = scalar_lea.sflag [#allocation4], %s992_s11 }
 0x28d   : > { %p1354_p12 = pnand %p2205_p9, %p2204_p7 }
 0x28f   : > { %1556 = dma.done.wait (!%p1354_p12), %s993_s7, 4096  }
 0x290   : > { %1558 = vsyncadd (!%p1354_p12), %s993_s7, 4294963200  ;;  %p19_p1 = scmp.ge.s32.totalorder %s1729_s29, 4   ;;  %s2206_s18 = smov %s1565_s19 }
 0x291   : > { %s2207_s19 = smov %s1569_s20  ;;  %s2208_s20 = smov %s1745_s27 }
 0x292   : > { %s2209_s21 = smov %s1729_s29  ;;  %21 = sbr.rel (!%p19_p1) target bundleno = 6 (0x6), region = 93 }
 0x299   :  { %998 = vsyncpa [#allocation3], 1 }
 0x29a   :  { %1000 = vsyncpa [#allocation3 + $0x1], 1 }
 0x29b   :  { %1001 = vsyncpa [#allocation6], 1 }
 0x29c   :  { %1002 = vsyncpa [#allocation4], 1 }
 0x29d   :  { %1004 = vsyncpa [#allocation4 + $0x1], 1 }

</bundles_post_ra>
